<compile_context>
chip_gen: v7x
topology: tpu7x:2x2x1
jax: 0.10.0
libtpu: 0.0.40
codegen_flags: <defaults>
</compile_context>

<pallas_src>
import jax
import jax.numpy as jnp
from jax.experimental import pallas as pl
from jax.experimental.pallas import tpu as pltpu

LAYOUT_SIZE = 8
IN_DIM = LAYOUT_SIZE * LAYOUT_SIZE * 4   # 256
H1 = 512
H2 = 256
OUT_DIM = 1
W3_LANES = 128                            # layer-3 weight padded to one full lane tile


def _round_up(x, m):
    return ((x + m - 1) // m) * m


def _disc_kernel(x_ref, w1_ref, b1_ref, w2_ref, b2_ref, w3_ref, b3_ref, o_ref):
    # Layer 1: (TM, 256) @ (256, 512) -- bf16 MXU matmul, f32 accumulate.
    x = x_ref[...]
    if x.dtype != jnp.bfloat16:
        x = x.astype(jnp.bfloat16)
    h1 = jnp.dot(x, w1_ref[...], preferred_element_type=jnp.float32)
    h1 = jnp.maximum(h1 + b1_ref[...], 0.0)

    # Layer 2: (TM, 512) @ (512, 256) -- bf16 MXU matmul, f32 accumulate.
    h2 = jnp.dot(h1.astype(jnp.bfloat16), w2_ref[...],
                 preferred_element_type=jnp.float32)
    h2 = jnp.maximum(h2 + b2_ref[...], 0.0)

    # Layer 3 on the MXU as well: RHS is a full (256, 128) lane tile (only
    # column 0 holds real weights).  Costs a few vmatmuls; avoids a large XLU
    # cross-lane reduction of a (TM, 256) product at large TM.
    l3 = jnp.dot(h2.astype(jnp.bfloat16), w3_ref[...],
                 preferred_element_type=jnp.float32)              # (TM, 128)
    logits = l3[:, 0:1] + b3_ref[0, 0]                            # (TM, 1)

    # Exact sigmoid: EUP exp + exact divide (logits block is tiny).
    o_ref[...] = (1.0 / (1.0 + jnp.exp(-logits))).astype(o_ref.dtype)


def discriminator_forward(x, params, *, tm=2048):
    """x: (B, 256) in float32 or bfloat16. params: f32 dict, W stored (in, out)."""
    B = x.shape[0]
    assert x.shape[1] == IN_DIM

    # Batch tile: as large as the batch allows (amortizes per-step overhead);
    # VMEM stays tiny (x tile + ~0.6 MiB resident weights << default limits).
    TM = _round_up(min(tm, B), 8)
    # v7x has 2 TensorCores: keep >= 2 grid steps on the "parallel" axis when
    # the batch allows it.
    if B > 8 and pl.cdiv(B, TM) < 2:
        TM = _round_up(pl.cdiv(B, 2), 8)
    grid = (pl.cdiv(B, TM),)   # ragged tail handled by masked edge blocks (no jnp.pad)

    # bf16 weights: halve HBM/VMEM weight bytes, native MXU datapath. f32 biases.
    w1 = params["w1"].astype(jnp.bfloat16)                        # (256, 512)
    w2 = params["w2"].astype(jnp.bfloat16)                        # (512, 256)
    w3 = jnp.pad(params["w3"].astype(jnp.bfloat16),
                 ((0, 0), (0, W3_LANES - OUT_DIM)))               # (256, 128), col 0 real
    b1 = params["b1"].reshape(1, H1).astype(jnp.float32)
    b2 = params["b2"].reshape(1, H2).astype(jnp.float32)
    b3 = params["b3"].reshape(1, 1).astype(jnp.float32)

    return pl.pallas_call(
        _disc_kernel,
        out_shape=jax.ShapeDtypeStruct((B, OUT_DIM), jnp.float32),
        grid=grid,
        in_specs=[
            pl.BlockSpec((TM, IN_DIM), lambda i: (i, 0)),         # x: streamed per batch tile
            pl.BlockSpec((IN_DIM, H1), lambda i: (0, 0)),         # w1: VMEM-resident
            pl.BlockSpec((1, H1), lambda i: (0, 0)),              # b1
            pl.BlockSpec((H1, H2), lambda i: (0, 0)),             # w2: VMEM-resident
            pl.BlockSpec((1, H2), lambda i: (0, 0)),              # b2
            pl.BlockSpec((H2, W3_LANES), lambda i: (0, 0)),       # w3 (lane-padded)
            pl.BlockSpec((1, 1), lambda i: (0, 0),
                         memory_space=pltpu.MemorySpace.SMEM),    # b3 scalar in SMEM
        ],
        out_specs=pl.BlockSpec((TM, OUT_DIM), lambda i: (i, 0)),
        compiler_params=pltpu.CompilerParams(
            dimension_semantics=("parallel",)),                   # 2-TC split on v7x
    )(x, w1, b1, w2, b2, w3, b3)


def init_params(key):
    """Deterministic init mimicking nn.Linear's U(-1/sqrt(fan_in), 1/sqrt(fan_in))."""
    ks = jax.random.split(key, 6)

    def linear(kw, kb, fan_in, fan_out):
        bound = 1.0 / jnp.sqrt(fan_in)
        # stored as (in, out) so the kernel computes x @ W
        w = jax.random.uniform(kw, (fan_in, fan_out), jnp.float32, -bound, bound)
        b = jax.random.uniform(kb, (1, fan_out), jnp.float32, -bound, bound)
        return w, b

    w1, b1 = linear(ks[0], ks[1], IN_DIM, H1)
    w2, b2 = linear(ks[2], ks[3], H1, H2)
    w3, b3 = linear(ks[4], ks[5], H2, OUT_DIM)
    return {"w1": w1, "b1": b1, "w2": w2, "b2": b2, "w3": w3, "b3": b3}


def _reference_forward(x, p):
    h1 = jnp.maximum(x @ p["w1"] + p["b1"], 0.0)
    h2 = jnp.maximum(h1 @ p["w2"] + p["b2"], 0.0)
    return jax.nn.sigmoid(h2 @ p["w3"] + p["b3"])


if __name__ == "__main__":
    key = jax.random.PRNGKey(0)
    k_param, k_x1, k_x2 = jax.random.split(key, 3)
    params = init_params(k_param)

    # Small batch (single tile, grid=1).
    B1 = 8
    x1 = jax.random.normal(k_x1, (B1, IN_DIM), jnp.float32)
    out1 = jax.block_until_ready(discriminator_forward(x1, params))
    ref1 = _reference_forward(x1, params)
    assert out1.shape == (B1, OUT_DIM)
    # bf16 weights -> loosened tolerance vs f32 reference (documented trade-off).
    assert jnp.allclose(out1, ref1, atol=2e-2, rtol=2e-2), "mismatch (small batch)"

    # Ragged multi-tile batch (exercises >=2 grid steps + masked edge blocks).
    B2 = 300
    x2 = jax.random.normal(k_x2, (B2, IN_DIM), jnp.float32)
    out2 = jax.block_until_ready(discriminator_forward(x2, params))
    ref2 = _reference_forward(x2, params)
    assert out2.shape == (B2, OUT_DIM)
    assert jnp.allclose(out2, ref2, atol=2e-2, rtol=2e-2), "mismatch (ragged batch)"

    print("KERNEL_OK")
</pallas_src>

<mosaic_0001>
module attributes {stable_mosaic.version = 11 : i64} {
  func.func @_disc_kernel(%arg0: i32, %arg1: memref<8x256xf32, #tpu.memory_space<vmem>>, %arg2: memref<256x512xbf16, #tpu.memory_space<vmem>>, %arg3: memref<1x512xf32, #tpu.memory_space<vmem>>, %arg4: memref<512x256xbf16, #tpu.memory_space<vmem>>, %arg5: memref<1x256xf32, #tpu.memory_space<vmem>>, %arg6: memref<256x128xbf16, #tpu.memory_space<vmem>>, %arg7: memref<1x1xf32, #tpu.memory_space<smem>>, %arg8: memref<8x1xf32, #tpu.memory_space<vmem>>) attributes {dimension_semantics = [#tpu.dimension_semantics<parallel>], iteration_bounds = array<i64: 1>, scalar_prefetch = 0 : i64, scratch_operands = 0 : i64, tpu.core_type = #tpu.core_type<tc>, window_params = [{transform_indices = @transform_0, window_bounds = array<i64: 8, 256>}, {pipeline_mode = #tpu.pipeline_mode<synchronous>, transform_indices = @transform_1, window_bounds = array<i64: 256, 512>}, {pipeline_mode = #tpu.pipeline_mode<synchronous>, transform_indices = @transform_2, window_bounds = array<i64: 1, 512>}, {pipeline_mode = #tpu.pipeline_mode<synchronous>, transform_indices = @transform_3, window_bounds = array<i64: 512, 256>}, {pipeline_mode = #tpu.pipeline_mode<synchronous>, transform_indices = @transform_4, window_bounds = array<i64: 1, 256>}, {pipeline_mode = #tpu.pipeline_mode<synchronous>, transform_indices = @transform_5, window_bounds = array<i64: 256, 128>}, {transform_indices = @transform_6, window_bounds = array<i64: 1, 1>}, {transform_indices = @transform_7, window_bounds = array<i64: 8, 1>}]} {
    %c0 = arith.constant 0 : index
    %c0_0 = arith.constant 0 : index
    %0 = vector.load %arg1[%c0, %c0_0] : memref<8x256xf32, #tpu.memory_space<vmem>>, vector<8x256xf32>
    %1 = arith.truncf %0 : vector<8x256xf32> to vector<8x256xbf16>
    %c0_1 = arith.constant 0 : index
    %c0_2 = arith.constant 0 : index
    %2 = vector.load %arg2[%c0_1, %c0_2] : memref<256x512xbf16, #tpu.memory_space<vmem>>, vector<256x512xbf16>
    %cst = arith.constant dense<0.000000e+00> : vector<8x512xf32>
    %3 = tpu.matmul %1, %2, %cst {dimension_numbers = #tpu.dot_dimension_numbers<[1], [0], [0], [1], [0, 0, 1, 1], [], []>} : vector<8x256xbf16>, vector<256x512xbf16>, vector<8x512xf32> -> vector<8x512xf32>
    %c0_3 = arith.constant 0 : index
    %c0_4 = arith.constant 0 : index
    %4 = vector.load %arg3[%c0_3, %c0_4] : memref<1x512xf32, #tpu.memory_space<vmem>>, vector<1x512xf32>
    %5 = vector.broadcast %4 : vector<1x512xf32> to vector<8x512xf32>
    %6 = arith.addf %3, %5 : vector<8x512xf32>
    %cst_5 = arith.constant 0.000000e+00 : f32
    %7 = vector.broadcast %cst_5 : f32 to vector<8x512xf32>
    %8 = arith.maximumf %6, %7 : vector<8x512xf32>
    %9 = arith.truncf %8 : vector<8x512xf32> to vector<8x512xbf16>
    %c0_6 = arith.constant 0 : index
    %c0_7 = arith.constant 0 : index
    %10 = vector.load %arg4[%c0_6, %c0_7] : memref<512x256xbf16, #tpu.memory_space<vmem>>, vector<512x256xbf16>
    %cst_8 = arith.constant dense<0.000000e+00> : vector<8x256xf32>
    %11 = tpu.matmul %9, %10, %cst_8 {dimension_numbers = #tpu.dot_dimension_numbers<[1], [0], [0], [1], [0, 0, 1, 1], [], []>} : vector<8x512xbf16>, vector<512x256xbf16>, vector<8x256xf32> -> vector<8x256xf32>
    %c0_9 = arith.constant 0 : index
    %c0_10 = arith.constant 0 : index
    %12 = vector.load %arg5[%c0_9, %c0_10] : memref<1x256xf32, #tpu.memory_space<vmem>>, vector<1x256xf32>
    %13 = vector.broadcast %12 : vector<1x256xf32> to vector<8x256xf32>
    %14 = arith.addf %11, %13 : vector<8x256xf32>
    %cst_11 = arith.constant 0.000000e+00 : f32
    %15 = vector.broadcast %cst_11 : f32 to vector<8x256xf32>
    %16 = arith.maximumf %14, %15 : vector<8x256xf32>
    %17 = arith.truncf %16 : vector<8x256xf32> to vector<8x256xbf16>
    %c0_12 = arith.constant 0 : index
    %c0_13 = arith.constant 0 : index
    %18 = vector.load %arg6[%c0_12, %c0_13] : memref<256x128xbf16, #tpu.memory_space<vmem>>, vector<256x128xbf16>
    %cst_14 = arith.constant dense<0.000000e+00> : vector<8x128xf32>
    %19 = tpu.matmul %17, %18, %cst_14 {dimension_numbers = #tpu.dot_dimension_numbers<[1], [0], [0], [1], [0, 0, 1, 1], [], []>} : vector<8x256xbf16>, vector<256x128xbf16>, vector<8x128xf32> -> vector<8x128xf32>
    %20 = vector.extract_strided_slice %19 {offsets = [0, 0], sizes = [8, 1], strides = [1, 1]} : vector<8x128xf32> to vector<8x1xf32>
    %c0_15 = arith.constant 0 : index
    %c0_16 = arith.constant 0 : index
    %21 = memref.load %arg7[%c0_15, %c0_16] : memref<1x1xf32, #tpu.memory_space<smem>>
    %22 = vector.broadcast %21 : f32 to vector<8x1xf32>
    %23 = arith.addf %20, %22 : vector<8x1xf32>
    %cst_17 = arith.constant 0.000000e+00 : f32
    %24 = vector.broadcast %cst_17 : f32 to vector<8x1xf32>
    %25 = arith.subf %24, %23 : vector<8x1xf32>
    %26 = math.exp %25 : vector<8x1xf32>
    %cst_18 = arith.constant 1.000000e+00 : f32
    %27 = vector.broadcast %cst_18 : f32 to vector<8x1xf32>
    %28 = arith.addf %27, %26 : vector<8x1xf32>
    %cst_19 = arith.constant 1.000000e+00 : f32
    %29 = vector.broadcast %cst_19 : f32 to vector<8x1xf32>
    %30 = arith.divf %29, %28 : vector<8x1xf32>
    %c0_20 = arith.constant 0 : index
    %c0_21 = arith.constant 0 : index
    %31 = vector.load %arg8[%c0_20, %c0_21] : memref<8x1xf32, #tpu.memory_space<vmem>>, vector<8x1xf32>
    tpu.vector_store %arg8[%c0_20, %c0_21], %30 {strides = array<i32>} : memref<8x1xf32, #tpu.memory_space<vmem>>, vector<8x1xf32>,
    return
  }
  func.func @transform_0(%arg0: i32) -> (i32, i32) {
    %c0_i32 = arith.constant 0 : i32
    %c0_i32_0 = arith.constant 0 : i32
    return %arg0, %c0_i32 : i32, i32
  }
  func.func @transform_1(%arg0: i32) -> (i32, i32) {
    %c0_i32 = arith.constant 0 : i32
    %c0_i32_0 = arith.constant 0 : i32
    %c0_i32_1 = arith.constant 0 : i32
    return %c0_i32, %c0_i32_0 : i32, i32
  }
  func.func @transform_2(%arg0: i32) -> (i32, i32) {
    %c0_i32 = arith.constant 0 : i32
    %c0_i32_0 = arith.constant 0 : i32
    %c0_i32_1 = arith.constant 0 : i32
    return %c0_i32, %c0_i32_0 : i32, i32
  }
  func.func @transform_3(%arg0: i32) -> (i32, i32) {
    %c0_i32 = arith.constant 0 : i32
    %c0_i32_0 = arith.constant 0 : i32
    %c0_i32_1 = arith.constant 0 : i32
    return %c0_i32, %c0_i32_0 : i32, i32
  }
  func.func @transform_4(%arg0: i32) -> (i32, i32) {
    %c0_i32 = arith.constant 0 : i32
    %c0_i32_0 = arith.constant 0 : i32
    %c0_i32_1 = arith.constant 0 : i32
    return %c0_i32, %c0_i32_0 : i32, i32
  }
  func.func @transform_5(%arg0: i32) -> (i32, i32) {
    %c0_i32 = arith.constant 0 : i32
    %c0_i32_0 = arith.constant 0 : i32
    %c0_i32_1 = arith.constant 0 : i32
    return %c0_i32, %c0_i32_0 : i32, i32
  }
  func.func @transform_6(%arg0: i32) -> (i32, i32) {
    %c0_i32 = arith.constant 0 : i32
    %c0_i32_0 = arith.constant 0 : i32
    %c0_i32_1 = arith.constant 0 : i32
    return %c0_i32, %c0_i32_0 : i32, i32
  }
  func.func @transform_7(%arg0: i32) -> (i32, i32) {
    %c0_i32 = arith.constant 0 : i32
    %c0_i32_0 = arith.constant 0 : i32
    return %arg0, %c0_i32 : i32, i32
  }
}

</mosaic_0001>

<bundles_post_ra>
// kernel: tpu_custom_call.1
= control target key start
LH: loop header
LB: loop body
LE: loop exit
PB: predicated region body
PF: predicated region fallthrough
CT: control target
= control target key end

     0   :  { %13 = vsyncpa [#allocation4], 0  ;;  %s1875_s0 = inlined_call_operand.hbm [shape: f32[8,256], index: 0, kind: input, shape index: {}]   ;;  %s1876_s1 = inlined_call_operand.hbm [shape: bf16[256,512], index: 1, kind: input, shape index: {}]   ;;  %s1877_s2 = inlined_call_operand.vmem [shape: f32[1,512], index: 2, kind: input, shape index: {}]   ;;  %s1878_s3 = inlined_call_operand.hbm [shape: bf16[512,256], index: 3, kind: input, shape index: {}]   ;;  %s1879_s4 = inlined_call_operand.vmem [shape: f32[1,256], index: 4, kind: input, shape index: {}]   ;;  %s1880_s5 = inlined_call_operand.hbm [shape: bf16[256,128], index: 5, kind: input, shape index: {}]   ;;  %s1881_s6 = inlined_call_operand.<no memory space> [shape: f32[1,1], index: 6, kind: input, shape index: {}]   ;;  %s1882_s7 = inlined_call_operand.vmem [shape: f32[8,1], index: 7, kind: output, shape index: {}]  }
   0x1   :  { %14 = vsyncpa [#allocation6], 0 }
   0x2   :  { %15 = vsyncpa [#allocation9], 0  ;;  %s1737_s24 = smov [#allocation5]   ;;  %s1643_s28 = scalar_lea.hbm %s1876_s1, 8192 }
   0x3   :  { %s31_s25 = sshll.u32 %s1737_s24, 4  ;;  %p1644_p0 = scmp.ne.s32.totalorder %s1876_s1, %s1643_s28  ;;  %s32_s25 = int_to_ptr.vmem [resolvable:$true] %s31_s25 }
   0x4   :  { %p1647_p1 = scmp.lt.u32.totalorder %s1643_s28, %s1876_s1 }
   0x6   :  { %p1649_p2 = pnand %p1647_p1, %p1644_p0 }
   0x8   :  { %1652 = shalt.err (!%p1649_p2)
}
   0x9   :  { %s1653_s10 = scalar_lea.vmem %s32_s25, 8192  ;;  %p1658_p4 = scmp.lt.s32.totalorder %s32_s25, %s32_s25 }
   0xa   :  { %p1654_p3 = scmp.ne.s32.totalorder %s32_s25, %s1653_s10  ;;  %p1659_p5 = scmp.lt.s32.totalorder %s1653_s10, %s1653_s10 }
   0xc   :  { %p1660_p6 = por %p1659_p5, %p1658_p4 }
   0xe   :  { %p1661_p7 = pnand %p1660_p6, %p1654_p3 }
  0x10   :  { %1664 = shalt.err (!%p1661_p7)
}
  0x11   :  { %s1738_s11 = smov 256   ;;  %s1739_s12 = smov 16  }
  0x12   :  { %37 = dma.hbm_to_vmem [thread:$0]  %s1876_s1, 8192, %s32_s25, [#allocation6], %s1738_s11, %s1738_s11, %s1739_s12  }
  0x13   :  { %s1740_s15 = smov [#allocation3]   ;;  %s1741_s17 = smov [#allocation7]  }
  0x14   :  { %s22_s16 = sshll.u32 %s1740_s15, 4  ;;  %s45_s18 = sshll.u32 %s1741_s17, 4  ;;  %s23_s16 = int_to_ptr.vmem [resolvable:$true] %s22_s16  ;;  %s46_s18 = int_to_ptr.vmem [resolvable:$true] %s45_s18 }
  0x15   :  { %s1665_s21 = scalar_lea.hbm %s1875_s0, 256 }
  0x16   :  { %p1666_p8 = scmp.ne.s32.totalorder %s1875_s0, %s1665_s21  ;;  %p1669_p9 = scmp.lt.u32.totalorder %s1665_s21, %s1875_s0 }
  0x18   :  { %p1671_p10 = pnand %p1669_p9, %p1666_p8 }
  0x1a   :  { %1674 = shalt.err (!%p1671_p10)
}
  0x1b   :  { %s1675_s1 = scalar_lea.vmem %s23_s16, 256  ;;  %p1680_p12 = scmp.lt.s32.totalorder %s23_s16, %s23_s16 }
  0x1c   :  { %p1676_p11 = scmp.ne.s32.totalorder %s23_s16, %s1675_s1  ;;  %p1681_p13 = scmp.lt.s32.totalorder %s1675_s1, %s1675_s1 }
  0x1e   :  { %p1682_p0 = por %p1681_p13, %p1680_p12 }
  0x20   :  { %p1683_p1 = pnand %p1682_p0, %p1676_p11 }
  0x22   :  { %1686 = shalt.err (!%p1683_p1)
}
  0x23   :  { %25 = dma.hbm_to_vmem [thread:$0]  %s1875_s0, 256, %s23_s16, [#allocation4]  }
  0x24   :  { %s1687_s30 = scalar_lea.hbm %s1878_s3, 8192 }
  0x25   :  { %p1688_p2 = scmp.ne.s32.totalorder %s1878_s3, %s1687_s30  ;;  %p1691_p3 = scmp.lt.u32.totalorder %s1687_s30, %s1878_s3 }
  0x27   :  { %p1693_p4 = pnand %p1691_p3, %p1688_p2 }
  0x29   :  { %1696 = shalt.err (!%p1693_p4)
}
  0x2a   :  { %s1697_s12 = scalar_lea.vmem %s46_s18, 8192  ;;  %p1702_p6 = scmp.lt.s32.totalorder %s46_s18, %s46_s18 }
  0x2b   :  { %p1698_p5 = scmp.ne.s32.totalorder %s46_s18, %s1697_s12  ;;  %p1703_p7 = scmp.lt.s32.totalorder %s1697_s12, %s1697_s12 }
  0x2d   :  { %p1704_p8 = por %p1703_p7, %p1702_p6 }
  0x2f   :  { %p1705_p9 = pnand %p1704_p8, %p1698_p5 }
  0x31   :  { %1708 = shalt.err (!%p1705_p9)
}
  0x32   :  { %s1742_s0 = smov 128   ;;  %s1743_s13 = smov 8  }
  0x33   :  { %51 = dma.hbm_to_vmem [thread:$0]  %s1878_s3, 8192, %s46_s18, [#allocation6], %s1742_s0, %s1742_s0, %s1743_s13  }
  0x34   :  { %s1744_s16 = smov [#allocation8]   ;;  %s1709_s21 = scalar_lea.hbm %s1880_s5, 2048 }
  0x35   :  { %s59_s17 = sshll.u32 %s1744_s16, 4  ;;  %p1710_p10 = scmp.ne.s32.totalorder %s1880_s5, %s1709_s21  ;;  %s60_s17 = int_to_ptr.vmem [resolvable:$true] %s59_s17 }
  0x36   :  { %p1713_p11 = scmp.lt.u32.totalorder %s1709_s21, %s1880_s5 }
  0x38   :  { %p1715_p12 = pnand %p1713_p11, %p1710_p10 }
  0x3a   :  { %1718 = shalt.err (!%p1715_p12)
}
  0x3b   :  { %s1719_s1 = scalar_lea.vmem %s60_s17, 2048  ;;  %p1724_p0 = scmp.lt.s32.totalorder %s60_s17, %s60_s17 }
  0x3c   :  { %p1720_p13 = scmp.ne.s32.totalorder %s60_s17, %s1719_s1  ;;  %p1725_p1 = scmp.lt.s32.totalorder %s1719_s1, %s1719_s1 }
  0x3e   :  { %p1726_p2 = por %p1725_p1, %p1724_p0 }
  0x40   :  { %p1727_p3 = pnand %p1726_p2, %p1720_p13 }
  0x42   :  { %1730 = shalt.err (!%p1727_p3)
}
  0x43   :  { %s1745_s3 = smov 64   ;;  %s1746_s18 = smov 4  }
  0x44   :  { %65 = dma.hbm_to_vmem [thread:$0]  %s1880_s5, 2048, %s60_s17, [#allocation9], %s1745_s3, %s1745_s3, %s1746_s18  }
  0x45   :  { %1731 = dma.done.wait [#allocation4], 256  }
  0x46   :  { %1732 = vsyncadd [#allocation4], 4294967040 }
  0x47   :  { %1733 = dma.done.wait [#allocation6], 16384  }
  0x48   :  { %1734 = vsyncadd [#allocation6], 4294950912 }
  0x49   :  { %1735 = dma.done.wait [#allocation9], 2048  }
  0x4a   :  { %1736 = vsyncadd [#allocation9], 4294965248  ;;  %v1431_v0 = vld [vmem:[#allocation5 + $0x4] ss:$16 sps:$4 sm:$0xff]   ;;  %v1433_v1 = vld [vmem:[#allocation5] ss:$16 sps:$4 sm:$0xff]  }
  0x4b   :  { %491 = vmatprep.subr.bf16.mxu1 %v1431_v0  ;;  %v1434_v2 = vld [vmem:[#allocation5 + $0x24] ss:$16 sps:$4 sm:$0xff]   ;;  %v1436_v3 = vld [vmem:[#allocation5 + $0x20] ss:$16 sps:$4 sm:$0xff]   ;;  %v82_v13 = vld [vmem:[#allocation3 + $0x8] sm:$0xff]  ;;  %vm1240_vm0 = vcmask 7168  }
  0x4c   :  { %492 = vmatpush1.bf16.msra.mxu1 %v1433_v1  ;;  %v1437_v4 = vld [vmem:[#allocation5 + $0x44] ss:$16 sps:$4 sm:$0xff]   ;;  %v1439_v5 = vld [vmem:[#allocation5 + $0x40] ss:$16 sps:$4 sm:$0xff]   ;;  %v1835_v14 = vpack.c.bf16 %v82_v13, %v82_v13  ;;  %v1481_v45 = vld [vmem:[#allocation5 + $0xc] ss:$16 sps:$4 sm:$0xff]  }
  0x4d   :  { %493 = vmatprep.subr.bf16.mxu1 %v1434_v2  ;;  %v1440_v6 = vld [vmem:[#allocation5 + $0x64] ss:$16 sps:$4 sm:$0xff]   ;;  %v1442_v7 = vld [vmem:[#allocation5 + $0x60] ss:$16 sps:$4 sm:$0xff]   ;;  %v1479_v47 = vld [vmem:[#allocation5 + $0x8] ss:$16 sps:$4 sm:$0xff]  }
  0x4e   :  { %v1443_v8 = vld [vmem:[#allocation5 + $0x84] ss:$16 sps:$4 sm:$0xff]   ;;  %v1445_v9 = vld [vmem:[#allocation5 + $0x80] ss:$16 sps:$4 sm:$0xff]   ;;  %523 = vmatprep.mubr.bf16.mxu1 %v1835_v14  ;;  %v1484_v49 = vld [vmem:[#allocation5 + $0x2c] ss:$16 sps:$4 sm:$0xff]  }
  0x4f   :  { %v1446_v10 = vld [vmem:[#allocation5 + $0xa4] ss:$16 sps:$4 sm:$0xff]   ;;  %v1448_v11 = vld [vmem:[#allocation5 + $0xa0] ss:$16 sps:$4 sm:$0xff]   ;;  %v1482_v52 = vld [vmem:[#allocation5 + $0x28] ss:$16 sps:$4 sm:$0xff]  }
  0x50   :  { %494 = vmatpush1.bf16.msra.mxu1 %v1436_v3  ;;  %v1449_v12 = vld [vmem:[#allocation5 + $0xc4] ss:$16 sps:$4 sm:$0xff]   ;;  %v1451_v15 = vld [vmem:[#allocation5 + $0xc0] ss:$16 sps:$4 sm:$0xff]   ;;  %v1487_v53 = vld [vmem:[#allocation5 + $0x4c] ss:$16 sps:$4 sm:$0xff]  }
  0x51   :  { %495 = vmatprep.subr.bf16.mxu1 %v1437_v4  ;;  %v1452_v16 = vld [vmem:[#allocation5 + $0xe4] ss:$16 sps:$4 sm:$0xff]   ;;  %v1454_v17 = vld [vmem:[#allocation5 + $0xe0] ss:$16 sps:$4 sm:$0xff]   ;;  %v1485_v56 = vld [vmem:[#allocation5 + $0x48] ss:$16 sps:$4 sm:$0xff]  }
  0x52   :  { %v1455_v18 = vld [vmem:[#allocation5 + $0x104] ss:$16 sps:$4 sm:$0xff]   ;;  %v1457_v19 = vld [vmem:[#allocation5 + $0x100] ss:$16 sps:$4 sm:$0xff]   ;;  %v1490_v57 = vld [vmem:[#allocation5 + $0x6c] ss:$16 sps:$4 sm:$0xff]  }
  0x53   :  { %v1458_v20 = vld [vmem:[#allocation5 + $0x124] ss:$16 sps:$4 sm:$0xff]   ;;  %v1460_v21 = vld [vmem:[#allocation5 + $0x120] ss:$16 sps:$4 sm:$0xff]   ;;  %v1488_v60 = vld [vmem:[#allocation5 + $0x68] ss:$16 sps:$4 sm:$0xff]  }
  0x54   :  { %496 = vmatpush1.bf16.msra.mxu1 %v1439_v5  ;;  %v1461_v22 = vld [vmem:[#allocation5 + $0x144] ss:$16 sps:$4 sm:$0xff]   ;;  %v1463_v23 = vld [vmem:[#allocation5 + $0x140] ss:$16 sps:$4 sm:$0xff]   ;;  %v1493_v61 = vld [vmem:[#allocation5 + $0x8c] ss:$16 sps:$4 sm:$0xff]  }
  0x55   :  { %497 = vmatprep.subr.bf16.mxu1 %v1440_v6  ;;  %v1464_v24 = vld [vmem:[#allocation5 + $0x164] ss:$16 sps:$4 sm:$0xff]   ;;  %v1466_v25 = vld [vmem:[#allocation5 + $0x160] ss:$16 sps:$4 sm:$0xff]   ;;  %v1491_v0 = vld [vmem:[#allocation5 + $0x88] ss:$16 sps:$4 sm:$0xff]  }
  0x56   :  { %v1467_v26 = vld [vmem:[#allocation5 + $0x184] ss:$16 sps:$4 sm:$0xff]   ;;  %v1529_v28 = vld [vmem:[#allocation7] ss:$8 sps:$4 sm:$0xff]   ;;  %v1532_v31 = vld [vmem:[#allocation7 + $0x10] ss:$8 sps:$4 sm:$0xff]  }
  0x57   :  { %v1527_v27 = vld [vmem:[#allocation7 + $0x4] ss:$8 sps:$4 sm:$0xff]   ;;  %v1530_v29 = vld [vmem:[#allocation7 + $0x14] ss:$8 sps:$4 sm:$0xff]   ;;  %v1469_v30 = vld [vmem:[#allocation5 + $0x180] ss:$16 sps:$4 sm:$0xff]  }
  0x58   :  { %498 = vmatpush1.bf16.msra.mxu1 %v1442_v7  ;;  %977 = vmatprep.subr.bf16.mxu0 %v1527_v27  ;;  %v1470_v32 = vld [vmem:[#allocation5 + $0x1a4] ss:$16 sps:$4 sm:$0xff]   ;;  %v1472_v34 = vld [vmem:[#allocation5 + $0x1a0] ss:$16 sps:$4 sm:$0xff]   ;;  %v1496_v1 = vld [vmem:[#allocation5 + $0xac] ss:$16 sps:$4 sm:$0xff]  }
  0x59   :  { %499 = vmatprep.subr.bf16.mxu1 %v1443_v8  ;;  %978 = vmatpush1.bf16.msra.mxu0 %v1529_v28  ;;  %v1533_v33 = vld [vmem:[#allocation7 + $0x24] ss:$8 sps:$4 sm:$0xff]   ;;  %v1535_v35 = vld [vmem:[#allocation7 + $0x20] ss:$8 sps:$4 sm:$0xff]   ;;  %v1536_v37 = vld [vmem:[#allocation7 + $0x34] ss:$8 sps:$4 sm:$0xff]  }
  0x5a   :  { %979 = vmatprep.subr.bf16.mxu0 %v1530_v29  ;;  %v1473_v36 = vld [vmem:[#allocation5 + $0x1c4] ss:$16 sps:$4 sm:$0xff]   ;;  %v1475_v38 = vld [vmem:[#allocation5 + $0x1c0] ss:$16 sps:$4 sm:$0xff]   ;;  %v1494_v4 = vld [vmem:[#allocation5 + $0xa8] ss:$16 sps:$4 sm:$0xff]  }
  0x5b   :  { %v1538_v39 = vld [vmem:[#allocation7 + $0x30] ss:$8 sps:$4 sm:$0xff]   ;;  %v1476_v40 = vld [vmem:[#allocation5 + $0x1e4] ss:$16 sps:$4 sm:$0xff]   ;;  %v1541_v44 = vld [vmem:[#allocation7 + $0x40] ss:$8 sps:$4 sm:$0xff]  }
  0x5c   :  { %500 = vmatpush1.bf16.msra.mxu1 %v1445_v9  ;;  %v1539_v41 = vld [vmem:[#allocation7 + $0x44] ss:$8 sps:$4 sm:$0xff]   ;;  %v1478_v42 = vld [vmem:[#allocation5 + $0x1e0] ss:$16 sps:$4 sm:$0xff]   ;;  %v1542_v46 = vld [vmem:[#allocation7 + $0x54] ss:$8 sps:$4 sm:$0xff]  }
  0x5d   :  { %501 = vmatprep.subr.bf16.mxu1 %v1446_v10  ;;  %980 = vmatpush1.bf16.msra.mxu0 %v1532_v31  ;;  %v81_v43 = vld [vmem:[#allocation3] sm:$0xff]  ;;  %v1545_v51 = vld [vmem:[#allocation7 + $0x64] ss:$8 sps:$4 sm:$0xff]   ;;  %v1547_v54 = vld [vmem:[#allocation7 + $0x60] ss:$8 sps:$4 sm:$0xff]  }
  0x5e   :  { %981 = vmatprep.subr.bf16.mxu0 %v1533_v33  ;;  %v1838_v48 = vpack.c.bf16 %v81_v43, %v81_v43  ;;  %v1544_v50 = vld [vmem:[#allocation7 + $0x50] ss:$8 sps:$4 sm:$0xff]   ;;  %v1548_v55 = vld [vmem:[#allocation7 + $0x74] ss:$8 sps:$4 sm:$0xff]   ;;  %v1551_v59 = vld [vmem:[#allocation7 + $0x84] ss:$8 sps:$4 sm:$0xff]  }
  0x5f   :  { %v1550_v58 = vld [vmem:[#allocation7 + $0x70] ss:$8 sps:$4 sm:$0xff]   ;;  %v1553_v62 = vld [vmem:[#allocation7 + $0x80] ss:$8 sps:$4 sm:$0xff]   ;;  %v1554_v63 = vld [vmem:[#allocation7 + $0x94] ss:$8 sps:$4 sm:$0xff]  }
  0x60   :  { %502 = vmatpush1.bf16.msra.mxu1 %v1448_v11  ;;  %v1556_v2 = vld [vmem:[#allocation7 + $0x90] ss:$8 sps:$4 sm:$0xff]   ;;  %v1557_v3 = vld [vmem:[#allocation7 + $0xa4] ss:$8 sps:$4 sm:$0xff]   ;;  %v1559_v6 = vld [vmem:[#allocation7 + $0xa0] ss:$8 sps:$4 sm:$0xff]  }
  0x61   :  { %503 = vmatprep.subr.bf16.mxu1 %v1449_v12  ;;  %982 = vmatpush1.bf16.msra.mxu0 %v1535_v35  ;;  %v1499_v5 = vld [vmem:[#allocation5 + $0xcc] ss:$16 sps:$4 sm:$0xff]   ;;  %v1497_v8 = vld [vmem:[#allocation5 + $0xc8] ss:$16 sps:$4 sm:$0xff]  }
  0x62   :  { %983 = vmatprep.subr.bf16.mxu0 %v1536_v37  ;;  %v1560_v7 = vld [vmem:[#allocation7 + $0xb4] ss:$8 sps:$4 sm:$0xff]   ;;  %v1562_v10 = vld [vmem:[#allocation7 + $0xb0] ss:$8 sps:$4 sm:$0xff]   ;;  %v1563_v11 = vld [vmem:[#allocation7 + $0xc4] ss:$8 sps:$4 sm:$0xff]  }
  0x63   :  { %v1502_v9 = vld [vmem:[#allocation5 + $0xec] ss:$16 sps:$4 sm:$0xff]   ;;  %v1500_v12 = vld [vmem:[#allocation5 + $0xe8] ss:$16 sps:$4 sm:$0xff]   ;;  %v1623_v37 = vld [vmem:[#allocation8 + $0x40] sm:$0xff]  }
  0x64   :  { %504 = vmatpush1.bf16.msra.mxu1 %v1451_v15  ;;  %v1505_v13 = vld [vmem:[#allocation5 + $0x10c] ss:$16 sps:$4 sm:$0xff]   ;;  %v1518_v27 = vld [vmem:[#allocation5 + $0x1a8] ss:$16 sps:$4 sm:$0xff]  }
  0x65   :  { %505 = vmatprep.subr.bf16.mxu1 %v1452_v16  ;;  %984 = vmatpush1.bf16.msra.mxu0 %v1538_v39  ;;  %v1566_v15 = vld [vmem:[#allocation7 + $0xd4] ss:$8 sps:$4 sm:$0xff]   ;;  %v1503_v16 = vld [vmem:[#allocation5 + $0x108] ss:$16 sps:$4 sm:$0xff]  }
  0x66   :  { %985 = vmatprep.subr.bf16.mxu0 %v1539_v41  ;;  %v1523_v28 = vld [vmem:[#allocation5 + $0x1cc] ss:$16 sps:$4 sm:$0xff]   ;;  %v1521_v29 = vld [vmem:[#allocation5 + $0x1c8] ss:$16 sps:$4 sm:$0xff]   ;;  %v1627_v41 = vld [vmem:[#allocation8 + $0x50] sm:$0xff]  }
  0x67   :  { %v1524_v31 = vld [vmem:[#allocation5 + $0x1e8] ss:$16 sps:$4 sm:$0xff]  }
  0x68   :  { %506 = vmatpush1.bf16.msra.mxu1 %v1454_v17  ;;  %v1508_v17 = vld [vmem:[#allocation5 + $0x12c] ss:$16 sps:$4 sm:$0xff]   ;;  %v1571_v33 = vld [vmem:[#allocation7 + $0xe0] ss:$8 sps:$4 sm:$0xff]   ;;  %v1574_v35 = vld [vmem:[#allocation7 + $0xf0] ss:$8 sps:$4 sm:$0xff]  }
  0x69   :  { %507 = vmatprep.subr.bf16.mxu1 %v1455_v18  ;;  %986 = vmatpush1.bf16.msra.mxu0 %v1541_v44  ;;  %v1568_v18 = vld [vmem:[#allocation7 + $0xd0] ss:$8 sps:$4 sm:$0xff]   ;;  %v1625_v39 = vld [vmem:[#allocation8 + $0x48] sm:$0xff]  }
  0x6a   :  { %987 = vmatprep.subr.bf16.mxu0 %v1542_v46  ;;  %v1629_v43 = vld [vmem:[#allocation8 + $0x58] sm:$0xff]   ;;  %v1632_v46 = vld [vmem:[#allocation8 + $0x20] sm:$0xff]  }
  0x6b   :  { %v1630_v44 = vld [vmem:[#allocation8 + $0x18] sm:$0xff]  }
  0x6c   :  { %508 = vmatpush1.bf16.msra.mxu1 %v1457_v19  ;;  %v1506_v19 = vld [vmem:[#allocation5 + $0x128] ss:$16 sps:$4 sm:$0xff]  }
  0x6d   :  { %509 = vmatprep.subr.bf16.mxu1 %v1458_v20  ;;  %988 = vmatpush1.bf16.msra.mxu0 %v1544_v50  ;;  %v1511_v20 = vld [vmem:[#allocation5 + $0x14c] ss:$16 sps:$4 sm:$0xff]  }
  0x6e   :  { %989 = vmatprep.subr.bf16.mxu0 %v1545_v51 }
  0x70   :  { %510 = vmatpush1.bf16.msra.mxu1 %v1460_v21  ;;  %v1509_v21 = vld [vmem:[#allocation5 + $0x148] ss:$16 sps:$4 sm:$0xff]  }
  0x71   :  { %511 = vmatprep.subr.bf16.mxu1 %v1461_v22  ;;  %990 = vmatpush1.bf16.msra.mxu0 %v1547_v54  ;;  %v1514_v22 = vld [vmem:[#allocation5 + $0x16c] ss:$16 sps:$4 sm:$0xff]  }
  0x72   :  { %991 = vmatprep.subr.bf16.mxu0 %v1548_v55 }
  0x74   :  { %512 = vmatpush1.bf16.msra.mxu1 %v1463_v23  ;;  %v1512_v23 = vld [vmem:[#allocation5 + $0x168] ss:$16 sps:$4 sm:$0xff]  }
  0x75   :  { %513 = vmatprep.subr.bf16.mxu1 %v1464_v24  ;;  %992 = vmatpush1.bf16.msra.mxu0 %v1550_v58  ;;  %v1517_v24 = vld [vmem:[#allocation5 + $0x18c] ss:$16 sps:$4 sm:$0xff]  }
  0x76   :  { %993 = vmatprep.subr.bf16.mxu0 %v1551_v59 }
  0x78   :  { %514 = vmatpush1.bf16.msra.mxu1 %v1466_v25  ;;  %v1515_v25 = vld [vmem:[#allocation5 + $0x188] ss:$16 sps:$4 sm:$0xff]  }
  0x79   :  { %515 = vmatprep.subr.bf16.mxu1 %v1467_v26  ;;  %994 = vmatpush1.bf16.msra.mxu0 %v1553_v62  ;;  %v1520_v26 = vld [vmem:[#allocation5 + $0x1ac] ss:$16 sps:$4 sm:$0xff]  }
  0x7a   :  { %995 = vmatprep.subr.bf16.mxu0 %v1554_v63 }
  0x7c   :  { %516 = vmatpush1.bf16.msra.mxu1 %v1469_v30  ;;  %v1526_v30 = vld [vmem:[#allocation5 + $0x1ec] ss:$16 sps:$4 sm:$0xff]  }
  0x7d   :  { %517 = vmatprep.subr.bf16.mxu1 %v1470_v32  ;;  %996 = vmatpush1.bf16.msra.mxu0 %v1556_v2  ;;  %v1569_v32 = vld [vmem:[#allocation7 + $0xe4] ss:$8 sps:$4 sm:$0xff]   ;;  %v1575_v2 = vld [vmem:[#allocation7 + $0x100] ss:$8 sps:$4 sm:$0xff]  }
  0x7e   :  { %997 = vmatprep.subr.bf16.mxu0 %v1557_v3  ;;  %v1580_v3 = vld [vmem:[#allocation7 + $0x114] ss:$8 sps:$4 sm:$0xff]  }
  0x80   :  { %518 = vmatpush1.bf16.msra.mxu1 %v1472_v34  ;;  %v1572_v34 = vld [vmem:[#allocation7 + $0xf4] ss:$8 sps:$4 sm:$0xff]  }
  0x81   :  { %519 = vmatprep.subr.bf16.mxu1 %v1473_v36  ;;  %998 = vmatpush1.bf16.msra.mxu0 %v1559_v6  ;;  %v1577_v36 = vld [vmem:[#allocation7 + $0x104] ss:$8 sps:$4 sm:$0xff]   ;;  %v1581_v6 = vld [vmem:[#allocation7 + $0x120] ss:$8 sps:$4 sm:$0xff]  }
  0x82   :  { %999 = vmatprep.subr.bf16.mxu0 %v1560_v7  ;;  %v1586_v7 = vld [vmem:[#allocation7 + $0x134] ss:$8 sps:$4 sm:$0xff]  }
  0x84   :  { %520 = vmatpush1.bf16.msra.mxu1 %v1475_v38  ;;  %v1624_v38 = vld [vmem:[#allocation8] sm:$0xff]  }
  0x85   :  { %521 = vmatprep.subr.bf16.mxu1 %v1476_v40  ;;  %1000 = vmatpush1.bf16.msra.mxu0 %v1562_v10  ;;  %v1626_v40 = vld [vmem:[#allocation8 + $0x8] sm:$0xff]  }
  0x86   :  { %1001 = vmatprep.subr.bf16.mxu0 %v1563_v11  ;;  %v1587_v10 = vld [vmem:[#allocation7 + $0x140] ss:$8 sps:$4 sm:$0xff]   ;;  %v1592_v11 = vld [vmem:[#allocation7 + $0x154] ss:$8 sps:$4 sm:$0xff]  }
  0x88   :  { %522 = vmatpush1.bf16.msra.mxu1 %v1478_v42  ;;  %v1628_v42 = vld [vmem:[#allocation8 + $0x10] sm:$0xff]  }
  0x89   :  { %532 = vmatprep.subr.bf16.mxu1 %v1481_v45  ;;  %v1631_v45 = vld [vmem:[#allocation8 + $0x60] sm:$0xff]  }
  0x8b   :  { %524 = vmatmul.mubr.bf16.vlgmr.msra.gmra.mrb[0].mxu1 %v1838_v48 }
  0x8c   :  { %533 = vmatpush1.bf16.msra.mxu1 %v1479_v47  ;;  %564 = vmatprep.mubr.bf16.mxu1 %v1835_v14  ;;  %v1565_v14 = vld [vmem:[#allocation7 + $0xc0] ss:$8 sps:$4 sm:$0xff]  }
  0x8d   :  { %534 = vmatprep.subr.bf16.mxu1 %v1484_v49  ;;  %1002 = vmatpush1.bf16.msra.mxu0 %v1565_v14  ;;  %v1633_v47 = vld [vmem:[#allocation8 + $0x68] sm:$0xff]   ;;  %v151_v49 = vlaneseq }
  0x8e   :  { %1003 = vmatprep.subr.bf16.mxu0 %v1566_v15  ;;  %v1593_v14 = vld [vmem:[#allocation7 + $0x160] ss:$8 sps:$4 sm:$0xff]   ;;  %v1598_v15 = vld [vmem:[#allocation7 + $0x174] ss:$8 sps:$4 sm:$0xff]  }
  0x8f   :  { %v1843_v50 = vshrl.u32 %v151_v49, 7  ;;  %v1637_v49 = vld [vmem:[#allocation8 + $0x78] sm:$0xff]  }
  0x90   :  { %535 = vmatpush1.bf16.msra.mxu1 %v1482_v52  ;;  %v1849_v52 = vld [vmem:[%s1877_s2] sm:$0xf] }
  0x91   :  { %536 = vmatprep.subr.bf16.mxu1 %v1487_v53  ;;  %1004 = vmatpush1.bf16.msra.mxu0 %v1568_v18  ;;  %v153_v51 = vsub.s32 0, %v1843_v50  ;;  %v157_v53 = vsub.s32 1, %v1843_v50  ;;  %v1599_v18 = vld [vmem:[#allocation7 + $0x180] ss:$8 sps:$4 sm:$0xff]  }
  0x92   :  { %1005 = vmatprep.subr.bf16.mxu0 %v1569_v32 }
  0x93   :  { %v154_v54 = vrot.slane %v1849_v52, %v153_v51  ;;  %v158_v55 = vrot.slane %v1849_v52, %v157_v53 }
  0x94   :  { %537 = vmatpush1.bf16.msra.mxu1 %v1485_v56 }
  0x95   :  { %538 = vmatprep.subr.bf16.mxu1 %v1490_v57  ;;  %1006 = vmatpush1.bf16.msra.mxu0 %v1571_v33 }
  0x96   :  { %1007 = vmatprep.subr.bf16.mxu0 %v1572_v34  ;;  %v1617_v34 = vld [vmem:[#allocation7 + $0x1e0] ss:$8 sps:$4 sm:$0xff]  }
  0x98   :  { %539 = vmatpush1.bf16.msra.mxu1 %v1488_v60 }
  0x99   :  { %540 = vmatprep.subr.bf16.mxu1 %v1493_v61  ;;  %1008 = vmatpush1.bf16.msra.mxu0 %v1574_v35  ;;  %v1622_v35 = vld [vmem:[#allocation7 + $0x1f4] ss:$8 sps:$4 sm:$0xff]  }
  0x9a   :  { %1018 = vmatprep.subr.bf16.mxu0 %v1577_v36 }
  0x9c   :  { %541 = vmatpush1.bf16.msra.mxu1 %v1491_v0 }
  0x9d   :  { %542 = vmatprep.subr.bf16.mxu1 %v1496_v1 }
  0xa0   :  { %543 = vmatpush1.bf16.msra.mxu1 %v1494_v4  ;;  %v1578_v4 = vld [vmem:[#allocation7 + $0x110] ss:$8 sps:$4 sm:$0xff]  }
  0xa1   :  { %544 = vmatprep.subr.bf16.mxu1 %v1499_v5  ;;  %v1583_v5 = vld [vmem:[#allocation7 + $0x124] ss:$8 sps:$4 sm:$0xff]  }
  0xa4   :  { %545 = vmatpush1.bf16.msra.mxu1 %v1497_v8  ;;  %v1584_v8 = vld [vmem:[#allocation7 + $0x130] ss:$8 sps:$4 sm:$0xff]  }
  0xa5   :  { %546 = vmatprep.subr.bf16.mxu1 %v1502_v9  ;;  %v1589_v9 = vld [vmem:[#allocation7 + $0x144] ss:$8 sps:$4 sm:$0xff]  }
  0xa8   :  { %547 = vmatpush1.bf16.msra.mxu1 %v1500_v12  ;;  %v1590_v12 = vld [vmem:[#allocation7 + $0x150] ss:$8 sps:$4 sm:$0xff]  }
  0xa9   :  { %548 = vmatprep.subr.bf16.mxu1 %v1505_v13  ;;  %v1595_v13 = vld [vmem:[#allocation7 + $0x164] ss:$8 sps:$4 sm:$0xff]  }
  0xac   :  { %549 = vmatpush1.bf16.msra.mxu1 %v1503_v16  ;;  %v1596_v16 = vld [vmem:[#allocation7 + $0x170] ss:$8 sps:$4 sm:$0xff]  }
  0xad   :  { %550 = vmatprep.subr.bf16.mxu1 %v1508_v17  ;;  %v1601_v17 = vld [vmem:[#allocation7 + $0x184] ss:$8 sps:$4 sm:$0xff]  }
  0xb0   :  { %551 = vmatpush1.bf16.msra.mxu1 %v1506_v19  ;;  %v1604_v19 = vld [vmem:[#allocation7 + $0x194] ss:$8 sps:$4 sm:$0xff]  }
  0xb1   :  { %552 = vmatprep.subr.bf16.mxu1 %v1511_v20  ;;  %v1602_v20 = vld [vmem:[#allocation7 + $0x190] ss:$8 sps:$4 sm:$0xff]  }
  0xb4   :  { %553 = vmatpush1.bf16.msra.mxu1 %v1509_v21  ;;  %v1607_v21 = vld [vmem:[#allocation7 + $0x1a4] ss:$8 sps:$4 sm:$0xff]  }
  0xb5   :  { %554 = vmatprep.subr.bf16.mxu1 %v1514_v22  ;;  %v1605_v22 = vld [vmem:[#allocation7 + $0x1a0] ss:$8 sps:$4 sm:$0xff]  }
  0xb8   :  { %555 = vmatpush1.bf16.msra.mxu1 %v1512_v23  ;;  %v1610_v23 = vld [vmem:[#allocation7 + $0x1b4] ss:$8 sps:$4 sm:$0xff]  }
  0xb9   :  { %556 = vmatprep.subr.bf16.mxu1 %v1517_v24  ;;  %v1608_v24 = vld [vmem:[#allocation7 + $0x1b0] ss:$8 sps:$4 sm:$0xff]  }
  0xbc   :  { %557 = vmatpush1.bf16.msra.mxu1 %v1515_v25  ;;  %v1613_v25 = vld [vmem:[#allocation7 + $0x1c4] ss:$8 sps:$4 sm:$0xff]  }
  0xbd   :  { %558 = vmatprep.subr.bf16.mxu1 %v1520_v26  ;;  %v1611_v26 = vld [vmem:[#allocation7 + $0x1c0] ss:$8 sps:$4 sm:$0xff]  }
  0xc0   :  { %559 = vmatpush1.bf16.msra.mxu1 %v1518_v27  ;;  %v1616_v27 = vld [vmem:[#allocation7 + $0x1d4] ss:$8 sps:$4 sm:$0xff]  }
  0xc1   :  { %560 = vmatprep.subr.bf16.mxu1 %v1523_v28  ;;  %v161_v28 = vsub.s32 2, %v1843_v50 }
  0xc3   :  { %v162_v32 = vrot.slane %v1849_v52, %v161_v28 }
  0xc4   :  { %561 = vmatpush1.bf16.msra.mxu1 %v1521_v29  ;;  %v1614_v29 = vld [vmem:[#allocation7 + $0x1d0] ss:$8 sps:$4 sm:$0xff]  }
  0xc5   :  { %562 = vmatprep.subr.bf16.mxu1 %v1526_v30  ;;  %v165_v30 = vsub.s32 3, %v1843_v50 }
  0xc7   :  { %v166_v33 = vrot.slane %v1849_v52, %v165_v30  ;;  %v1638_v52 = vld [vmem:[#allocation8 + $0x38] sm:$0xff]  }
  0xc8   :  { %563 = vmatpush1.bf16.msra.mxu1 %v1524_v31  ;;  %v1619_v31 = vld [vmem:[#allocation7 + $0x1e4] ss:$8 sps:$4 sm:$0xff]  }
  0xc9   :  { %1393 = vmatprep.subr.bf16.mxu1 %v1623_v37 }
  0xcb   :  { %565 = vmatmul.mubr.bf16.vlgmr.msra.gmra.mrb[4].mxu1 %v1838_v48  ;;  %v1634_v48 = vld [vmem:[#allocation8 + $0x28] sm:$0xff]  }
  0xcc   :  { %1394 = vmatpush3.bf16.msra.mxu1 %v1624_v38 }
  0xcd   :  { %1395 = vmatprep.subr.bf16.mxu1 %v1625_v39 }
  0xd0   :  { %1396 = vmatpush3.bf16.msra.mxu1 %v1626_v40 }
  0xd1   :  { %1397 = vmatprep.subr.bf16.mxu1 %v1627_v41  ;;  %v1620_v41 = vld [vmem:[#allocation7 + $0x1f0] ss:$8 sps:$4 sm:$0xff]  }
  0xd4   :  { %1398 = vmatpush3.bf16.msra.mxu1 %v1628_v42 }
  0xd5   :  { %1399 = vmatprep.subr.bf16.mxu1 %v1629_v43 }
  0xd8   :  { %1400 = vmatpush3.bf16.msra.mxu1 %v1630_v44 }
  0xd9   :  { %1401 = vmatprep.subr.bf16.mxu1 %v1631_v45 }
  0xdc   :  { %1402 = vmatpush3.bf16.msra.mxu1 %v1632_v46 }
  0xdd   :  { %1403 = vmatprep.subr.bf16.mxu1 %v1633_v47  ;;  %v1635_v47 = vld [vmem:[#allocation8 + $0x70] sm:$0xff]  }
  0xe0   :  { %1404 = vmatpush3.bf16.msra.mxu1 %v1634_v48  ;;  %v1636_v48 = vld [vmem:[#allocation8 + $0x30] sm:$0xff]  }
  0xe1   :  { %1405 = vmatprep.subr.bf16.mxu1 %v1635_v47 }
  0xe4   :  { %1406 = vmatpush3.bf16.msra.mxu1 %v1636_v48 }
  0xe5   :  { %1407 = vmatprep.subr.bf16.mxu1 %v1637_v49 }
  0xe8   :  { %1408 = vmatpush3.bf16.msra.mxu1 %v1638_v52 }
 0x15e   :  { %v525_v56 = vpop.f32.mrb[0].mxu1 }
 0x15f   :  { %v526_v57 = vadd.f32 %v525_v56, %v154_v54  ;;  %v527_v58 = vpop.f32.mrb[1].mxu1  ;;  %v645_v54 = vld [vmem:[%s1879_s4] sm:$0x3] }
 0x160   :  { %v528_v59 = vadd.f32 %v527_v58, %v158_v55  ;;  %v529_v60 = vpop.f32.mrb[2].mxu1  ;;  %v650_v55 = vrot.slane %v645_v54, %v153_v51  ;;  %v654_v56 = vrot.slane %v645_v54, %v157_v53  ;;  %v1232_v51 = vstv %s1881_s6 }
 0x161   :  { %v573_v61 = vmax.f32 %v526_v57, 0.0  ;;  %v530_v62 = vpop.f32.mrb[3].mxu1 }
 0x162   :  { %v574_v63 = vmax.f32 %v528_v59, 0.0 }
 0x163   :  { %v577_v0 = vpack.c.bf16 %v573_v61, %v573_v61 }
 0x164   :  { %v578_v1 = vpack.c.bf16 %v574_v63, %v574_v63 }
 0x166   :  { %1009 = vmatprep.mubr.bf16.mxu0 %v578_v1 }
 0x167   :  { %1010 = vmatmul.mubr.bf16.vlgmr.msra.gmra.mrb[0].mxu0 %v577_v0 }
 0x168   :  { %1019 = vmatpush1.bf16.msra.mxu0 %v1575_v2 }
 0x169   :  { %1020 = vmatprep.subr.bf16.mxu0 %v1580_v3 }
 0x16c   :  { %1021 = vmatpush1.bf16.msra.mxu0 %v1578_v4 }
 0x16d   :  { %1022 = vmatprep.subr.bf16.mxu0 %v1583_v5 }
 0x170   :  { %1023 = vmatpush1.bf16.msra.mxu0 %v1581_v6 }
 0x171   :  { %1024 = vmatprep.subr.bf16.mxu0 %v1586_v7 }
 0x174   :  { %1025 = vmatpush1.bf16.msra.mxu0 %v1584_v8 }
 0x175   :  { %1026 = vmatprep.subr.bf16.mxu0 %v1589_v9 }
 0x178   :  { %1027 = vmatpush1.bf16.msra.mxu0 %v1587_v10 }
 0x179   :  { %1028 = vmatprep.subr.bf16.mxu0 %v1592_v11 }
 0x17c   :  { %1029 = vmatpush1.bf16.msra.mxu0 %v1590_v12 }
 0x17d   :  { %1030 = vmatprep.subr.bf16.mxu0 %v1595_v13 }
 0x180   :  { %1031 = vmatpush1.bf16.msra.mxu0 %v1593_v14 }
 0x181   :  { %1032 = vmatprep.subr.bf16.mxu0 %v1598_v15 }
 0x184   :  { %1033 = vmatpush1.bf16.msra.mxu0 %v1596_v16 }
 0x185   :  { %1034 = vmatprep.subr.bf16.mxu0 %v1601_v17 }
 0x188   :  { %1035 = vmatpush1.bf16.msra.mxu0 %v1599_v18 }
 0x189   :  { %1036 = vmatprep.subr.bf16.mxu0 %v1604_v19 }
 0x18c   :  { %1037 = vmatpush1.bf16.msra.mxu0 %v1602_v20 }
 0x18d   :  { %1038 = vmatprep.subr.bf16.mxu0 %v1607_v21 }
 0x190   :  { %1039 = vmatpush1.bf16.msra.mxu0 %v1605_v22 }
 0x191   :  { %1040 = vmatprep.subr.bf16.mxu0 %v1610_v23 }
 0x194   :  { %1041 = vmatpush1.bf16.msra.mxu0 %v1608_v24 }
 0x195   :  { %1042 = vmatprep.subr.bf16.mxu0 %v1613_v25 }
 0x198   :  { %1043 = vmatpush1.bf16.msra.mxu0 %v1611_v26 }
 0x199   :  { %1044 = vmatprep.subr.bf16.mxu0 %v1616_v27 }
 0x19c   :  { %1045 = vmatpush1.bf16.msra.mxu0 %v1614_v29 }
 0x19d   :  { %1046 = vmatprep.subr.bf16.mxu0 %v1619_v31 }
 0x19e   :  { %v566_v36 = vpop.f32.mrb[4].mxu1 }
 0x19f   :  { %v567_v37 = vadd.f32 %v566_v36, %v162_v32  ;;  %v568_v38 = vpop.f32.mrb[5].mxu1 }
 0x1a0   :  { %v569_v39 = vadd.f32 %v568_v38, %v166_v33  ;;  %v570_v40 = vpop.f32.mrb[6].mxu1  ;;  %1047 = vmatpush1.bf16.msra.mxu0 %v1617_v34 }
 0x1a1   :  { %v575_v42 = vmax.f32 %v567_v37, 0.0  ;;  %v571_v43 = vpop.f32.mrb[7].mxu1  ;;  %1048 = vmatprep.subr.bf16.mxu0 %v1622_v35 }
 0x1a2   :  { %v576_v44 = vmax.f32 %v569_v39, 0.0 }
 0x1a3   :  { %v579_v46 = vpack.c.bf16 %v575_v42, %v575_v42 }
 0x1a4   :  { %v580_v45 = vpack.c.bf16 %v576_v44, %v576_v44  ;;  %1049 = vmatpush1.bf16.msra.mxu0 %v1620_v41 }
 0x1a6   :  { %1050 = vmatprep.mubr.bf16.mxu0 %v580_v45 }
 0x1a7   :  { %1051 = vmatmul.mubr.bf16.vlgmr.msra.gmra.mrb[0].mxu0 %v579_v46 }
 0x27a   :  { %v1052_v57 = vpop.f32.mrb[0].mxu0 }
 0x27b   :  { %v1415_v58 = vadd.f32 %v1052_v57, %v650_v55  ;;  %v1054_v59 = vpop.f32.mrb[1].mxu0 }
 0x27c   :  { %v1416_v60 = vadd.f32 %v1054_v59, %v654_v56  ;;  %v1056_v61 = vpop.f32.mrb[2].mxu0 }
 0x27d   :  { %v1059_v62 = vmax.f32 %v1415_v58, 0.0  ;;  %v1057_v63 = vpop.f32.mrb[3].mxu0 }
 0x27e   :  { %v1060_v0 = vmax.f32 %v1416_v60, 0.0 }
 0x27f   :  { %v1061_v2 = vpack.c.bf16 %v1059_v62, %v1059_v62 }
 0x280   :  { %v1062_v1 = vpack.c.bf16 %v1060_v0, %v1060_v0 }
 0x282   :  { %1223 = vmatprep.mubr.bf16.mxu1 %v1062_v1 }
 0x283   :  { %1224 = vmatmul.mubr.bf16.vlgmr.msra.gmra.mrb[8].mxu1 %v1061_v2 }
 0x356   :  { %v1409_v3 = vpop.f32.mrb[8].mxu1 }
 0x357   :  { %v1410_v4 = vpop.f32.mrb[9].mxu1 }
 0x358   :  { %v1411_v50 = vadd.f32 %v1410_v4, %v1409_v3  ;;  %v1412_v53 = vpop.f32.mrb[10].mxu1 }
 0x359   :  { %v1413_v5 = vpop.f32.mrb[11].mxu1 }
 0x35a   :  { %v1233_v6 = vadd.f32 %v1411_v50, %v1232_v51 }
 0x35c   :  { %v1234_v7 = vsub.f32 0.0, %v1233_v6 }
 0x35e   :  { %v1235_v8 = vmul.f32 1.442695, %v1234_v7 }
 0x360   :  { %1639 = vpow2.f32 %v1235_v8 }
 0x36a   :  { %v1640_v9 = vpop.eup %1639 }
 0x36b   :  { %v1237_v10 = vadd.f32 1.0, %v1640_v9 }
 0x36d   :  { %1641 = vrcp.f32 %v1237_v10 }
 0x377   :  { %v1642_v11 = vpop.eup %1641 }
 0x378   :  { %1241 = vst.msk [vmem:[%s1882_s7] sm:$0xff] %vm1240_vm0, %v1642_v11 }
 0x379   :  { %1246 = vsyncpa [#allocation4], 1 }
 0x37a   :  { %1247 = vsyncpa [#allocation6], 1 }
 0x37b   :  { %1248 = vsyncpa [#allocation9], 1 }

</bundles_post_ra>
